<compile_context>
chip_gen: v7x
topology: tpu7x:2x2x1
jax: 0.10.0
libtpu: 0.0.40
codegen_flags: <defaults>
</compile_context>

<pallas_src>
import functools

import jax
import jax.numpy as jnp
from jax.experimental import pallas as pl
from jax.experimental.pallas import tpu as pltpu


def _round_up(x, m):
    return (x + m - 1) // m * m


def _residual_block_kernel(x_hbm_ref, coord_ref, w_ref, b_ref, o_ref,
                           slab_ref, sem_ref, *,
                           activation, kernel_size, height, width,
                           tile, num_tiles, halo):
    # x_hbm_ref : (N, C, HWp)          f32  full image, left in HBM (pl.ANY)
    # coord_ref : (2, TILE)            i32  row 0 = spatial row, row 1 = col
    # w_ref     : (K*K, C, C)          bf16 taps, [kh*K + kw] -> (Cout, Cin)
    # b_ref     : (C, 1)               f32
    # o_ref     : (C, TILE)            f32
    # slab_ref  : (C, HWp + 2*halo)    f32  persistent per-image slab scratch
    # sem_ref   : DMA semaphores (2,)
    K = kernel_size
    pad = K // 2
    P = pad * (width + 1)              # halo actually required on each side
    C = o_ref.shape[0]
    n = pl.program_id(0)
    t = pl.program_id(1)
    T = num_tiles                      # static

    # ---- manual chunk DMA: HBM -> persistent slab (no wrapper-side gather) --
    # Chunk c covers flat pixels [c*tile, (c+1)*tile) and lands at a
    # 128-aligned lane offset (halo + c*tile) inside the slab.  Tile t's
    # window only ever touches chunks {t-1, t, t+1} (tile >= halo >= P), so a
    # one-chunk-ahead prefetch keeps the copies off the critical path.
    def chunk_copy(c):
        src = x_hbm_ref.at[n, :, pl.ds(c * tile, tile)]
        dst = slab_ref.at[:, pl.ds(halo + c * tile, tile)]
        return pltpu.make_async_copy(src, dst, sem_ref.at[c & 1])

    @pl.when(t == 0)
    def _prime():
        # Start of a new image: (re)fill chunks 0 and 1.  Chunk 2 is started
        # below only after these waits, because it shares chunk 0's semaphore.
        chunk_copy(0).start()
        if T > 1:
            chunk_copy(1).start()
        chunk_copy(0).wait()
        if T > 1:
            chunk_copy(1).wait()

    if T > 2:
        @pl.when(t + 2 < T)
        def _prefetch():                       # overlap with this tile's compute
            chunk_copy(t + 2).start()

        @pl.when(jnp.logical_and(t > 0, t + 1 < T))
        def _wait_right_halo():                # started one grid step earlier
            chunk_copy(t + 1).wait()

    # ---- load the halo'd window once, cast to bf16 once ---------------------
    win_start = pl.multiple_of(t * tile, 128)          # lane-aligned
    win = slab_ref[:, pl.ds(win_start, tile + 2 * halo)]   # f32 (C, tile+2*halo)
    win_bf16 = win.astype(jnp.bfloat16)                 # single hoisted cast
    residual = win[:, halo:halo + tile]                 # exact f32 input pixels

    # ---- boundary masks: computed once per tile, reused by the taps ---------
    row = coord_ref[0:1, :]                             # (1, TILE) int32
    col = coord_ref[1:2, :]
    row_ge = {d: row >= d for d in range(1, pad + 1)}
    row_lt = {d: row < height - d for d in range(1, pad + 1)}
    col_ge = {d: col >= d for d in range(1, pad + 1)}
    col_lt = {d: col < width - d for d in range(1, pad + 1)}

    # Bias folded into the accumulator initialisation; acc stays in vregs.
    acc = jnp.broadcast_to(b_ref[...], (C, tile))

    base = halo - P                                     # static, >= 0
    for kh in range(K):
        for kw in range(K):
            off = base + kh * width + kw                # static tap offset
            patch = win_bf16[:, off:off + tile]         # slice of the bf16 window
            conds = []
            if kh < pad:
                conds.append(row_ge[pad - kh])
            elif kh > pad:
                conds.append(row_lt[kh - pad])
            if kw < pad:
                conds.append(col_ge[pad - kw])
            elif kw > pad:
                conds.append(col_lt[kw - pad])
            if conds:                                   # zero out-of-image taps
                ok = conds[0]
                for extra in conds[1:]:
                    ok = jnp.logical_and(ok, extra)
                patch = jnp.where(ok, patch, 0)
            acc = acc + jnp.dot(w_ref[kh * K + kw], patch,
                                preferred_element_type=jnp.float32)
            # NOTE: for compute-bound cases (large C on v5e) fold the K*K taps
            # into one (C, K*K*C) @ (K*K*C, TILE) contraction instead.

    o_ref[...] = (residual + activation(acc)).astype(o_ref.dtype)


def _pick_tile(hw_pad, halo, cap=2048):
    """Largest lane-dense tile <= cap that divides hw_pad, is >= halo, and
    leaves a few tiles per image so the per-chunk DMAs overlap with compute."""
    divisors = [c for c in range(128, hw_pad + 1, 128)
                if hw_pad % c == 0 and (c >= halo or c == hw_pad)]
    if not divisors:
        return hw_pad
    for min_tiles in (4, 2, 1):
        ok = [c for c in divisors if c <= cap and hw_pad // c >= min_tiles]
        if ok:
            return max(ok)
    return min(divisors)


def residual_block(x_nchw, weight_oihw, bias, *, activation=jax.nn.relu):
    """Forward of ResidualBlock: x + activation(conv2d_same(x, w) + b).

    x_nchw:      (N, C, H, W) float32 (PyTorch NCHW convention)
    weight_oihw: (C, C, K, K)
    bias:        (C,)
    """
    N, C, H, W = x_nchw.shape
    K = weight_oihw.shape[-1]
    pad = K // 2
    hw = H * W
    P = pad * (W + 1)
    halo = _round_up(max(P, 1), 128)          # 128-aligned halo margin

    # Flatten spatial (free reshape).  If hw is ragged, pad it up to a lane
    # multiple (tiny pass, ragged case only); padded lanes are discarded later.
    hw_pad = _round_up(hw, 128)
    x_flat = x_nchw.reshape(N, C, hw)
    if hw_pad != hw:
        x_flat = jnp.pad(x_flat, ((0, 0), (0, 0), (0, hw_pad - hw)))

    tile = _pick_tile(hw_pad, halo)
    T = hw_pad // tile
    assert T == 1 or tile >= halo             # window only needs adjacent chunks

    # Row / column of every (padded) output position; the kernel derives its
    # 4 boundary masks from this once per tile (no vector div/mod in-kernel).
    flat_idx = jnp.arange(hw_pad, dtype=jnp.int32)
    coords = jnp.stack([flat_idx // W, flat_idx % W], axis=0)      # (2, hw_pad)

    # Weights: OIHW -> (K*K, Cout, Cin), bf16 for the MXU (f32 accumulation).
    w_taps = jnp.transpose(weight_oihw, (2, 3, 0, 1)).reshape(K * K, C, C)
    w_taps = w_taps.astype(jnp.bfloat16)
    b_col = bias.reshape(C, 1).astype(jnp.float32)

    kernel = functools.partial(
        _residual_block_kernel, activation=activation, kernel_size=K,
        height=H, width=W, tile=tile, num_tiles=T, halo=halo)

    # VMEM budget: persistent slab + double-buffered output/coords/weights plus
    # the in-flight window; cap with v7x's 64 MiB physical VMEM in mind.
    slab_bytes = C * (hw_pad + 2 * halo) * 4
    est = (slab_bytes + 2 * C * tile * 4 + 2 * 2 * tile * 4
           + 2 * K * K * C * C * 2 + 4 * C * (tile + 2 * halo) * 4)
    vmem_limit = int(min(60 * 2**20, max(16 * 2**20, 2 * est)))

    out_flat = pl.pallas_call(
        kernel,
        out_shape=jax.ShapeDtypeStruct((N, C, hw_pad), x_nchw.dtype),
        grid_spec=pltpu.PrefetchScalarGridSpec(
            num_scalar_prefetch=0,
            grid=(N, T),
            in_specs=[
                pl.BlockSpec(memory_space=pl.ANY),                 # x stays in HBM
                pl.BlockSpec((2, tile), lambda n, t: (0, t)),      # coords
                pl.BlockSpec((K * K, C, C), lambda n, t: (0, 0, 0)),
                pl.BlockSpec((C, 1), lambda n, t: (0, 0)),
            ],
            out_specs=pl.BlockSpec((None, C, tile), lambda n, t: (n, 0, t)),
            scratch_shapes=[
                pltpu.VMEM((C, hw_pad + 2 * halo), jnp.float32),   # image slab
                pltpu.SemaphoreType.DMA((2,)),
            ]),
        compiler_params=pltpu.CompilerParams(
            # Tile axis carries the slab scratch between steps -> "arbitrary".
            dimension_semantics=("parallel", "arbitrary"),
            vmem_limit_bytes=vmem_limit),
    )(x_flat, coords, w_taps, b_col)

    if hw_pad != hw:
        out_flat = out_flat[:, :, :hw]
    return out_flat.reshape(N, C, H, W)       # free reshape back to NCHW


def _reference(x, w, b, activation):
    # f32 reference with conv operands rounded to bf16, matching the kernel's
    # bf16-operand / f32-accumulation MXU math (residual & bias stay f32).
    pad = w.shape[-1] // 2
    xb = x.astype(jnp.bfloat16).astype(jnp.float32)
    wb = w.astype(jnp.bfloat16).astype(jnp.float32)
    conv = jax.lax.conv_general_dilated(
        xb, wb, window_strides=(1, 1),
        padding=((pad, pad), (pad, pad)),
        dimension_numbers=("NCHW", "OIHW", "NCHW"),
        precision=jax.lax.Precision.HIGHEST)
    return x + activation(conv + b.reshape(1, -1, 1, 1))


if __name__ == "__main__":
    key = jax.random.PRNGKey(0)
    # 16x16 exercises the 2-tile path; 32x32 exercises the full prefetch
    # pipeline (4 tiles per image: prime, steady-state prefetch, drain).
    for (N, C, H, W, K) in [(2, 4, 16, 16, 3), (2, 4, 32, 32, 3)]:
        kx, kw_key, kb, key = jax.random.split(key, 4)
        x = jax.random.normal(kx, (N, C, H, W), dtype=jnp.float32)
        fan_in = C * K * K
        weight = jax.random.normal(kw_key, (C, C, K, K),
                                   dtype=jnp.float32) / jnp.sqrt(fan_in)
        bias = jax.random.normal(kb, (C,), dtype=jnp.float32) * 0.1

        out = residual_block(x, weight, bias, activation=jax.nn.relu)
        out = jax.block_until_ready(out)

        ref = _reference(x, weight, bias, jax.nn.relu)
        assert out.shape == (N, C, H, W)
        assert jnp.allclose(out, ref, atol=1e-4, rtol=1e-4), \
            f"mismatch vs reference at shape {(N, C, H, W, K)}"

    print("KERNEL_OK")
</pallas_src>

<mosaic_0001>
module attributes {stable_mosaic.version = 11 : i64} {
  func.func @_residual_block_kernel(%arg0: i32, %arg1: i32, %arg2: memref<2x4x256xf32, #tpu.memory_space<any>>, %arg3: memref<2x128xi32, #tpu.memory_space<vmem>>, %arg4: memref<9x4x4xbf16, #tpu.memory_space<vmem>>, %arg5: memref<4x1xf32, #tpu.memory_space<vmem>>, %arg6: memref<1x4x128xf32, #tpu.memory_space<vmem>>, %arg7: memref<4x512xf32, #tpu.memory_space<vmem>>, %arg8: memref<2x!tpu.dma_semaphore, #tpu.memory_space<semaphore_mem>>) attributes {dimension_semantics = [#tpu.dimension_semantics<parallel>, #tpu.dimension_semantics<arbitrary>], iteration_bounds = array<i64: 2, 2>, scalar_prefetch = 0 : i64, scratch_operands = 2 : i64, tpu.core_type = #tpu.core_type<tc>, window_params = [{}, {transform_indices = @transform_1, window_bounds = array<i64: 2, 128>}, {pipeline_mode = #tpu.pipeline_mode<synchronous>, transform_indices = @transform_2, window_bounds = array<i64: 9, 4, 4>}, {pipeline_mode = #tpu.pipeline_mode<synchronous>, transform_indices = @transform_3, window_bounds = array<i64: 4, 1>}, {transform_indices = @transform_4, window_bounds = array<i64: 1, 4, 128>}]} {
    %c0_i32 = arith.constant 0 : i32
    %0 = arith.cmpi eq, %arg1, %c0_i32 : i32
    %1 = arith.extui %0 : i1 to i32
    %c0_i32_0 = arith.constant 0 : i32
    %2 = arith.cmpi ne, %1, %c0_i32_0 : i32
    scf.if %2 {
      %c0_i32_48 = arith.constant 0 : i32
      %c0_i32_49 = arith.constant 0 : i32
      %c0_i32_50 = arith.constant 0 : i32
      %117 = tpu.memref_slice %arg2[%arg0, %c0_i32_49, %c0_i32_50] : memref<2x4x256xf32, #tpu.memory_space<any>> -> memref<1x4x128xf32, #tpu.memory_space<any>>
      %118 = tpu.memref_squeeze %117 : memref<1x4x128xf32, #tpu.memory_space<any>> -> memref<4x128xf32, #tpu.memory_space<any>>
      %c0_i32_51 = arith.constant 0 : i32
      %c128_i32_52 = arith.constant 128 : i32
      %119 = tpu.memref_slice %arg7[%c0_i32_51, %c128_i32_52] : memref<4x512xf32, #tpu.memory_space<vmem>> -> memref<4x128xf32, #tpu.memory_space<vmem>>
      %120 = tpu.memref_slice %arg8[%c0_i32_48] : memref<2x!tpu.dma_semaphore, #tpu.memory_space<semaphore_mem>> -> memref<1x!tpu.dma_semaphore, #tpu.memory_space<semaphore_mem>>
      %121 = tpu.memref_squeeze %120 : memref<1x!tpu.dma_semaphore, #tpu.memory_space<semaphore_mem>> -> memref<!tpu.dma_semaphore, #tpu.memory_space<semaphore_mem>>
      tpu.enqueue_dma source(%118 : memref<4x128xf32, #tpu.memory_space<any>>) target(%119 : memref<4x128xf32, #tpu.memory_space<vmem>>) target_semaphore(%121 : memref<!tpu.dma_semaphore, #tpu.memory_space<semaphore_mem>>)
      %c1_i32_53 = arith.constant 1 : i32
      %c0_i32_54 = arith.constant 0 : i32
      %c128_i32_55 = arith.constant 128 : i32
      %122 = tpu.memref_slice %arg2[%arg0, %c0_i32_54, %c128_i32_55] : memref<2x4x256xf32, #tpu.memory_space<any>> -> memref<1x4x128xf32, #tpu.memory_space<any>>
      %123 = tpu.memref_squeeze %122 : memref<1x4x128xf32, #tpu.memory_space<any>> -> memref<4x128xf32, #tpu.memory_space<any>>
      %c0_i32_56 = arith.constant 0 : i32
      %c256_i32 = arith.constant 256 : i32
      %124 = tpu.memref_slice %arg7[%c0_i32_56, %c256_i32] : memref<4x512xf32, #tpu.memory_space<vmem>> -> memref<4x128xf32, #tpu.memory_space<vmem>>
      %125 = tpu.memref_slice %arg8[%c1_i32_53] : memref<2x!tpu.dma_semaphore, #tpu.memory_space<semaphore_mem>> -> memref<1x!tpu.dma_semaphore, #tpu.memory_space<semaphore_mem>>
      %126 = tpu.memref_squeeze %125 : memref<1x!tpu.dma_semaphore, #tpu.memory_space<semaphore_mem>> -> memref<!tpu.dma_semaphore, #tpu.memory_space<semaphore_mem>>
      tpu.enqueue_dma source(%123 : memref<4x128xf32, #tpu.memory_space<any>>) target(%124 : memref<4x128xf32, #tpu.memory_space<vmem>>) target_semaphore(%126 : memref<!tpu.dma_semaphore, #tpu.memory_space<semaphore_mem>>)
      %c0_i32_57 = arith.constant 0 : i32
      %c0_i32_58 = arith.constant 0 : i32
      %c0_i32_59 = arith.constant 0 : i32
      %127 = tpu.memref_slice %arg2[%arg0, %c0_i32_58, %c0_i32_59] : memref<2x4x256xf32, #tpu.memory_space<any>> -> memref<1x4x128xf32, #tpu.memory_space<any>>
      %128 = tpu.memref_squeeze %127 : memref<1x4x128xf32, #tpu.memory_space<any>> -> memref<4x128xf32, #tpu.memory_space<any>>
      %c0_i32_60 = arith.constant 0 : i32
      %c128_i32_61 = arith.constant 128 : i32
      %129 = tpu.memref_slice %arg7[%c0_i32_60, %c128_i32_61] : memref<4x512xf32, #tpu.memory_space<vmem>> -> memref<4x128xf32, #tpu.memory_space<vmem>>
      %130 = tpu.memref_slice %arg8[%c0_i32_57] : memref<2x!tpu.dma_semaphore, #tpu.memory_space<semaphore_mem>> -> memref<1x!tpu.dma_semaphore, #tpu.memory_space<semaphore_mem>>
      %131 = tpu.memref_squeeze %130 : memref<1x!tpu.dma_semaphore, #tpu.memory_space<semaphore_mem>> -> memref<!tpu.dma_semaphore, #tpu.memory_space<semaphore_mem>>
      tpu.wait_dma2 semaphore(%131 : memref<!tpu.dma_semaphore, #tpu.memory_space<semaphore_mem>>) src(%128 : memref<4x128xf32, #tpu.memory_space<any>>) dst(%129 : memref<4x128xf32, #tpu.memory_space<vmem>>)
      %c1_i32_62 = arith.constant 1 : i32
      %c0_i32_63 = arith.constant 0 : i32
      %c128_i32_64 = arith.constant 128 : i32
      %132 = tpu.memref_slice %arg2[%arg0, %c0_i32_63, %c128_i32_64] : memref<2x4x256xf32, #tpu.memory_space<any>> -> memref<1x4x128xf32, #tpu.memory_space<any>>
      %133 = tpu.memref_squeeze %132 : memref<1x4x128xf32, #tpu.memory_space<any>> -> memref<4x128xf32, #tpu.memory_space<any>>
      %c0_i32_65 = arith.constant 0 : i32
      %c256_i32_66 = arith.constant 256 : i32
      %134 = tpu.memref_slice %arg7[%c0_i32_65, %c256_i32_66] : memref<4x512xf32, #tpu.memory_space<vmem>> -> memref<4x128xf32, #tpu.memory_space<vmem>>
      %135 = tpu.memref_slice %arg8[%c1_i32_62] : memref<2x!tpu.dma_semaphore, #tpu.memory_space<semaphore_mem>> -> memref<1x!tpu.dma_semaphore, #tpu.memory_space<semaphore_mem>>
      %136 = tpu.memref_squeeze %135 : memref<1x!tpu.dma_semaphore, #tpu.memory_space<semaphore_mem>> -> memref<!tpu.dma_semaphore, #tpu.memory_space<semaphore_mem>>
      tpu.wait_dma2 semaphore(%136 : memref<!tpu.dma_semaphore, #tpu.memory_space<semaphore_mem>>) src(%133 : memref<4x128xf32, #tpu.memory_space<any>>) dst(%134 : memref<4x128xf32, #tpu.memory_space<vmem>>)
    } else {
    }
    %c128_i32 = arith.constant 128 : i32
    %3 = arith.muli %arg1, %c128_i32 : i32
    %4 = tpu.assume_multiple %3, 128 : i32
    %c0 = arith.constant 0 : index
    %5 = arith.index_cast %4 : i32 to index
    %6 = vector.load %arg7[%c0, %5] : memref<4x512xf32, #tpu.memory_space<vmem>>, vector<4x384xf32>
    %7 = arith.truncf %6 : vector<4x384xf32> to vector<4x384xbf16>
    %8 = vector.extract_strided_slice %6 {offsets = [0, 128], sizes = [4, 128], strides = [1, 1]} : vector<4x384xf32> to vector<4x128xf32>
    %c0_1 = arith.constant 0 : index
    %c0_2 = arith.constant 0 : index
    %9 = vector.load %arg3[%c0_1, %c0_2] : memref<2x128xi32, #tpu.memory_space<vmem>>, vector<1x128xi32>
    %c1 = arith.constant 1 : index
    %c0_3 = arith.constant 0 : index
    %10 = vector.load %arg3[%c1, %c0_3] : memref<2x128xi32, #tpu.memory_space<vmem>>, vector<1x128xi32>
    %c1_i32 = arith.constant 1 : i32
    %11 = vector.broadcast %c1_i32 : i32 to vector<1x128xi32>
    %12 = arith.cmpi sge, %9, %11 : vector<1x128xi32>
    %c15_i32 = arith.constant 15 : i32
    %13 = vector.broadcast %c15_i32 : i32 to vector<1x128xi32>
    %14 = arith.cmpi slt, %9, %13 : vector<1x128xi32>
    %c1_i32_4 = arith.constant 1 : i32
    %15 = vector.broadcast %c1_i32_4 : i32 to vector<1x128xi32>
    %16 = arith.cmpi sge, %10, %15 : vector<1x128xi32>
    %c15_i32_5 = arith.constant 15 : i32
    %17 = vector.broadcast %c15_i32_5 : i32 to vector<1x128xi32>
    %18 = arith.cmpi slt, %10, %17 : vector<1x128xi32>
    %c0_6 = arith.constant 0 : index
    %c0_7 = arith.constant 0 : index
    %19 = vector.load %arg5[%c0_6, %c0_7] : memref<4x1xf32, #tpu.memory_space<vmem>>, vector<4x1xf32>
    %20 = vector.shape_cast %19 : vector<4x1xf32> to vector<4x1xf32>
    %21 = vector.broadcast %20 : vector<4x1xf32> to vector<4x128xf32>
    %22 = vector.extract_strided_slice %7 {offsets = [0, 111], sizes = [4, 128], strides = [1, 1]} : vector<4x384xbf16> to vector<4x128xbf16>
    %23 = arith.andi %12, %16 : vector<1x128xi1>
    %c0_i32_8 = arith.constant 0 : i32
    %24 = arith.sitofp %c0_i32_8 : i32 to bf16
    %25 = vector.shape_cast %23 : vector<1x128xi1> to vector<1x128xi1>
    %26 = vector.broadcast %25 : vector<1x128xi1> to vector<4x128xi1>
    %27 = vector.broadcast %24 : bf16 to vector<4x128xbf16>
    %28 = arith.select %26, %22, %27 : vector<4x128xi1>, vector<4x128xbf16>
    %c0_9 = arith.constant 0 : index
    %c0_10 = arith.constant 0 : index
    %c0_11 = arith.constant 0 : index
    %29 = vector.load %arg4[%c0_9, %c0_10, %c0_11] : memref<9x4x4xbf16, #tpu.memory_space<vmem>>, vector<1x4x4xbf16>
    %30 = vector.shape_cast %29 : vector<1x4x4xbf16> to vector<4x4xbf16>
    %cst = arith.constant dense<0.000000e+00> : vector<4x128xf32>
    %31 = tpu.matmul %30, %28, %cst {dimension_numbers = #tpu.dot_dimension_numbers<[1], [0], [0], [1], [0, 0, 1, 1], [], []>} : vector<4x4xbf16>, vector<4x128xbf16>, vector<4x128xf32> -> vector<4x128xf32>
    %32 = arith.addf %21, %31 : vector<4x128xf32>
    %33 = vector.extract_strided_slice %7 {offsets = [0, 112], sizes = [4, 128], strides = [1, 1]} : vector<4x384xbf16> to vector<4x128xbf16>
    %c0_i32_12 = arith.constant 0 : i32
    %34 = arith.sitofp %c0_i32_12 : i32 to bf16
    %35 = vector.shape_cast %12 : vector<1x128xi1> to vector<1x128xi1>
    %36 = vector.broadcast %35 : vector<1x128xi1> to vector<4x128xi1>
    %37 = vector.broadcast %34 : bf16 to vector<4x128xbf16>
    %38 = arith.select %36, %33, %37 : vector<4x128xi1>, vector<4x128xbf16>
    %c1_13 = arith.constant 1 : index
    %c0_14 = arith.constant 0 : index
    %c0_15 = arith.constant 0 : index
    %39 = vector.load %arg4[%c1_13, %c0_14, %c0_15] : memref<9x4x4xbf16, #tpu.memory_space<vmem>>, vector<1x4x4xbf16>
    %40 = vector.shape_cast %39 : vector<1x4x4xbf16> to vector<4x4xbf16>
    %cst_16 = arith.constant dense<0.000000e+00> : vector<4x128xf32>
    %41 = tpu.matmul %40, %38, %cst_16 {dimension_numbers = #tpu.dot_dimension_numbers<[1], [0], [0], [1], [0, 0, 1, 1], [], []>} : vector<4x4xbf16>, vector<4x128xbf16>, vector<4x128xf32> -> vector<4x128xf32>
    %42 = arith.addf %32, %41 : vector<4x128xf32>
    %43 = vector.extract_strided_slice %7 {offsets = [0, 113], sizes = [4, 128], strides = [1, 1]} : vector<4x384xbf16> to vector<4x128xbf16>
    %44 = arith.andi %12, %18 : vector<1x128xi1>
    %c0_i32_17 = arith.constant 0 : i32
    %45 = arith.sitofp %c0_i32_17 : i32 to bf16
    %46 = vector.shape_cast %44 : vector<1x128xi1> to vector<1x128xi1>
    %47 = vector.broadcast %46 : vector<1x128xi1> to vector<4x128xi1>
    %48 = vector.broadcast %45 : bf16 to vector<4x128xbf16>
    %49 = arith.select %47, %43, %48 : vector<4x128xi1>, vector<4x128xbf16>
    %c2 = arith.constant 2 : index
    %c0_18 = arith.constant 0 : index
    %c0_19 = arith.constant 0 : index
    %50 = vector.load %arg4[%c2, %c0_18, %c0_19] : memref<9x4x4xbf16, #tpu.memory_space<vmem>>, vector<1x4x4xbf16>
    %51 = vector.shape_cast %50 : vector<1x4x4xbf16> to vector<4x4xbf16>
    %cst_20 = arith.constant dense<0.000000e+00> : vector<4x128xf32>
    %52 = tpu.matmul %51, %49, %cst_20 {dimension_numbers = #tpu.dot_dimension_numbers<[1], [0], [0], [1], [0, 0, 1, 1], [], []>} : vector<4x4xbf16>, vector<4x128xbf16>, vector<4x128xf32> -> vector<4x128xf32>
    %53 = arith.addf %42, %52 : vector<4x128xf32>
    %54 = vector.extract_strided_slice %7 {offsets = [0, 127], sizes = [4, 128], strides = [1, 1]} : vector<4x384xbf16> to vector<4x128xbf16>
    %c0_i32_21 = arith.constant 0 : i32
    %55 = arith.sitofp %c0_i32_21 : i32 to bf16
    %56 = vector.shape_cast %16 : vector<1x128xi1> to vector<1x128xi1>
    %57 = vector.broadcast %56 : vector<1x128xi1> to vector<4x128xi1>
    %58 = vector.broadcast %55 : bf16 to vector<4x128xbf16>
    %59 = arith.select %57, %54, %58 : vector<4x128xi1>, vector<4x128xbf16>
    %c3 = arith.constant 3 : index
    %c0_22 = arith.constant 0 : index
    %c0_23 = arith.constant 0 : index
    %60 = vector.load %arg4[%c3, %c0_22, %c0_23] : memref<9x4x4xbf16, #tpu.memory_space<vmem>>, vector<1x4x4xbf16>
    %61 = vector.shape_cast %60 : vector<1x4x4xbf16> to vector<4x4xbf16>
    %cst_24 = arith.constant dense<0.000000e+00> : vector<4x128xf32>
    %62 = tpu.matmul %61, %59, %cst_24 {dimension_numbers = #tpu.dot_dimension_numbers<[1], [0], [0], [1], [0, 0, 1, 1], [], []>} : vector<4x4xbf16>, vector<4x128xbf16>, vector<4x128xf32> -> vector<4x128xf32>
    %63 = arith.addf %53, %62 : vector<4x128xf32>
    %64 = vector.extract_strided_slice %7 {offsets = [0, 128], sizes = [4, 128], strides = [1, 1]} : vector<4x384xbf16> to vector<4x128xbf16>
    %c4 = arith.constant 4 : index
    %c0_25 = arith.constant 0 : index
    %c0_26 = arith.constant 0 : index
    %65 = vector.load %arg4[%c4, %c0_25, %c0_26] : memref<9x4x4xbf16, #tpu.memory_space<vmem>>, vector<1x4x4xbf16>
    %66 = vector.shape_cast %65 : vector<1x4x4xbf16> to vector<4x4xbf16>
    %cst_27 = arith.constant dense<0.000000e+00> : vector<4x128xf32>
    %67 = tpu.matmul %66, %64, %cst_27 {dimension_numbers = #tpu.dot_dimension_numbers<[1], [0], [0], [1], [0, 0, 1, 1], [], []>} : vector<4x4xbf16>, vector<4x128xbf16>, vector<4x128xf32> -> vector<4x128xf32>
    %68 = arith.addf %63, %67 : vector<4x128xf32>
    %69 = vector.extract_strided_slice %7 {offsets = [0, 129], sizes = [4, 128], strides = [1, 1]} : vector<4x384xbf16> to vector<4x128xbf16>
    %c0_i32_28 = arith.constant 0 : i32
    %70 = arith.sitofp %c0_i32_28 : i32 to bf16
    %71 = vector.shape_cast %18 : vector<1x128xi1> to vector<1x128xi1>
    %72 = vector.broadcast %71 : vector<1x128xi1> to vector<4x128xi1>
    %73 = vector.broadcast %70 : bf16 to vector<4x128xbf16>
    %74 = arith.select %72, %69, %73 : vector<4x128xi1>, vector<4x128xbf16>
    %c5 = arith.constant 5 : index
    %c0_29 = arith.constant 0 : index
    %c0_30 = arith.constant 0 : index
    %75 = vector.load %arg4[%c5, %c0_29, %c0_30] : memref<9x4x4xbf16, #tpu.memory_space<vmem>>, vector<1x4x4xbf16>
    %76 = vector.shape_cast %75 : vector<1x4x4xbf16> to vector<4x4xbf16>
    %cst_31 = arith.constant dense<0.000000e+00> : vector<4x128xf32>
    %77 = tpu.matmul %76, %74, %cst_31 {dimension_numbers = #tpu.dot_dimension_numbers<[1], [0], [0], [1], [0, 0, 1, 1], [], []>} : vector<4x4xbf16>, vector<4x128xbf16>, vector<4x128xf32> -> vector<4x128xf32>
    %78 = arith.addf %68, %77 : vector<4x128xf32>
    %79 = vector.extract_strided_slice %7 {offsets = [0, 143], sizes = [4, 128], strides = [1, 1]} : vector<4x384xbf16> to vector<4x128xbf16>
    %80 = arith.andi %14, %16 : vector<1x128xi1>
    %c0_i32_32 = arith.constant 0 : i32
    %81 = arith.sitofp %c0_i32_32 : i32 to bf16
    %82 = vector.shape_cast %80 : vector<1x128xi1> to vector<1x128xi1>
    %83 = vector.broadcast %82 : vector<1x128xi1> to vector<4x128xi1>
    %84 = vector.broadcast %81 : bf16 to vector<4x128xbf16>
    %85 = arith.select %83, %79, %84 : vector<4x128xi1>, vector<4x128xbf16>
    %c6 = arith.constant 6 : index
    %c0_33 = arith.constant 0 : index
    %c0_34 = arith.constant 0 : index
    %86 = vector.load %arg4[%c6, %c0_33, %c0_34] : memref<9x4x4xbf16, #tpu.memory_space<vmem>>, vector<1x4x4xbf16>
    %87 = vector.shape_cast %86 : vector<1x4x4xbf16> to vector<4x4xbf16>
    %cst_35 = arith.constant dense<0.000000e+00> : vector<4x128xf32>
    %88 = tpu.matmul %87, %85, %cst_35 {dimension_numbers = #tpu.dot_dimension_numbers<[1], [0], [0], [1], [0, 0, 1, 1], [], []>} : vector<4x4xbf16>, vector<4x128xbf16>, vector<4x128xf32> -> vector<4x128xf32>
    %89 = arith.addf %78, %88 : vector<4x128xf32>
    %90 = vector.extract_strided_slice %7 {offsets = [0, 144], sizes = [4, 128], strides = [1, 1]} : vector<4x384xbf16> to vector<4x128xbf16>
    %c0_i32_36 = arith.constant 0 : i32
    %91 = arith.sitofp %c0_i32_36 : i32 to bf16
    %92 = vector.shape_cast %14 : vector<1x128xi1> to vector<1x128xi1>
    %93 = vector.broadcast %92 : vector<1x128xi1> to vector<4x128xi1>
    %94 = vector.broadcast %91 : bf16 to vector<4x128xbf16>
    %95 = arith.select %93, %90, %94 : vector<4x128xi1>, vector<4x128xbf16>
    %c7 = arith.constant 7 : index
    %c0_37 = arith.constant 0 : index
    %c0_38 = arith.constant 0 : index
    %96 = vector.load %arg4[%c7, %c0_37, %c0_38] : memref<9x4x4xbf16, #tpu.memory_space<vmem>>, vector<1x4x4xbf16>
    %97 = vector.shape_cast %96 : vector<1x4x4xbf16> to vector<4x4xbf16>
    %cst_39 = arith.constant dense<0.000000e+00> : vector<4x128xf32>
    %98 = tpu.matmul %97, %95, %cst_39 {dimension_numbers = #tpu.dot_dimension_numbers<[1], [0], [0], [1], [0, 0, 1, 1], [], []>} : vector<4x4xbf16>, vector<4x128xbf16>, vector<4x128xf32> -> vector<4x128xf32>
    %99 = arith.addf %89, %98 : vector<4x128xf32>
    %100 = vector.extract_strided_slice %7 {offsets = [0, 145], sizes = [4, 128], strides = [1, 1]} : vector<4x384xbf16> to vector<4x128xbf16>
    %101 = arith.andi %14, %18 : vector<1x128xi1>
    %c0_i32_40 = arith.constant 0 : i32
    %102 = arith.sitofp %c0_i32_40 : i32 to bf16
    %103 = vector.shape_cast %101 : vector<1x128xi1> to vector<1x128xi1>
    %104 = vector.broadcast %103 : vector<1x128xi1> to vector<4x128xi1>
    %105 = vector.broadcast %102 : bf16 to vector<4x128xbf16>
    %106 = arith.select %104, %100, %105 : vector<4x128xi1>, vector<4x128xbf16>
    %c8 = arith.constant 8 : index
    %c0_41 = arith.constant 0 : index
    %c0_42 = arith.constant 0 : index
    %107 = vector.load %arg4[%c8, %c0_41, %c0_42] : memref<9x4x4xbf16, #tpu.memory_space<vmem>>, vector<1x4x4xbf16>
    %108 = vector.shape_cast %107 : vector<1x4x4xbf16> to vector<4x4xbf16>
    %cst_43 = arith.constant dense<0.000000e+00> : vector<4x128xf32>
    %109 = tpu.matmul %108, %106, %cst_43 {dimension_numbers = #tpu.dot_dimension_numbers<[1], [0], [0], [1], [0, 0, 1, 1], [], []>} : vector<4x4xbf16>, vector<4x128xbf16>, vector<4x128xf32> -> vector<4x128xf32>
    %110 = arith.addf %99, %109 : vector<4x128xf32>
    %cst_44 = arith.constant 0.000000e+00 : f32
    %111 = vector.broadcast %cst_44 : f32 to vector<4x128xf32>
    %112 = arith.maximumf %110, %111 : vector<4x128xf32>
    %113 = arith.addf %8, %112 : vector<4x128xf32>
    %c0_45 = arith.constant 0 : index
    %c0_46 = arith.constant 0 : index
    %c0_47 = arith.constant 0 : index
    %114 = vector.load %arg6[%c0_45, %c0_46, %c0_47] : memref<1x4x128xf32, #tpu.memory_space<vmem>>, vector<1x4x128xf32>
    %115 = vector.shape_cast %114 : vector<1x4x128xf32> to vector<4x128xf32>
    %116 = vector.shape_cast %113 : vector<4x128xf32> to vector<1x4x128xf32>
    tpu.vector_store %arg6[%c0_45, %c0_46, %c0_47], %116 {strides = array<i32>} : memref<1x4x128xf32, #tpu.memory_space<vmem>>, vector<1x4x128xf32>,
    return
  }
  func.func @transform_1(%arg0: i32, %arg1: i32) -> (i32, i32) {
    %c0_i32 = arith.constant 0 : i32
    %c0_i32_0 = arith.constant 0 : i32
    return %c0_i32, %arg1 : i32, i32
  }
  func.func @transform_2(%arg0: i32, %arg1: i32) -> (i32, i32, i32) {
    %c0_i32 = arith.constant 0 : i32
    %c0_i32_0 = arith.constant 0 : i32
    %c0_i32_1 = arith.constant 0 : i32
    %c0_i32_2 = arith.constant 0 : i32
    return %c0_i32, %c0_i32_0, %c0_i32_1 : i32, i32, i32
  }
  func.func @transform_3(%arg0: i32, %arg1: i32) -> (i32, i32) {
    %c0_i32 = arith.constant 0 : i32
    %c0_i32_0 = arith.constant 0 : i32
    %c0_i32_1 = arith.constant 0 : i32
    return %c0_i32, %c0_i32_0 : i32, i32
  }
  func.func @transform_4(%arg0: i32, %arg1: i32) -> (i32, i32, i32) {
    %c0_i32 = arith.constant 0 : i32
    %c0_i32_0 = arith.constant 0 : i32
    return %arg0, %c0_i32, %arg1 : i32, i32, i32
  }
}

</mosaic_0001>

<bundles_post_ra>
// kernel: tpu_custom_call.1
= control target key start
LH: loop header
LB: loop body
LE: loop exit
PB: predicated region body
PF: predicated region fallthrough
CT: control target
= control target key end

     0   :  { %9 = vsyncpa [#allocation5], 0  ;;  %s1795_s0 = inlined_call_operand.vmem [shape: f32[2,4,256], index: 0, kind: input, shape index: {}]   ;;  %s1796_s1 = inlined_call_operand.vmem [shape: s32[2,256], index: 1, kind: input, shape index: {}]   ;;  %s1797_s2 = inlined_call_operand.vmem [shape: bf16[9,4,4], index: 2, kind: input, shape index: {}]   ;;  %s1798_s3 = inlined_call_operand.vmem [shape: f32[4,1], index: 3, kind: input, shape index: {}]   ;;  %s1799_s4 = inlined_call_operand.hbm [shape: f32[2,4,256], index: 4, kind: output, shape index: {}]  }
   0x1   :  { %11 = vsyncpa [#allocation5 + $0x1], 0  ;;  %s1464_s15 = smov 0   ;;  %s1466_s16 = smov 0  }
   0x2   :  { %s1468_s17 = smov 0   ;;  %s1470_s18 = smov 0  }
   0x3   :  { %s1472_s19 = smov 0   ;;  %s1474_s20 = smov 0  }
   0x4   :  { %s1476_s21 = smov 0   ;;  %s1478_s22 = smov 0  }
   0x5 LB: > { %s1099_s23 = sadd.s32 4294967295, %s1425_s22   ;;  %s1100_s24 = sadd.s32 4294967294, %s1425_s22   ;;  %s1425_s22 = sphi %s1478_s22, %s17_s22   ;;  %s1421_s21 = sphi %s1476_s21, %s1820_s21   ;;  %s1417_s20 = sphi %s1474_s20, %s1819_s20   ;;  %s1413_s19 = sphi %s1472_s19, %s1818_s19   ;;  %s1409_s18 = sphi %s1470_s18, %s1817_s18   ;;  %s1405_s17 = sphi %s1468_s17, %s1816_s17   ;;  %s1401_s16 = sphi %s1466_s16, %s1815_s16   ;;  %s1397_s15 = sphi %s1464_s15, %s1814_s15  }
   0x6   : > { %s26_s25 = sadd.s32 1, %s1417_s20  ;;  %s29_s26 = sadd.s32 1, %s1421_s21 }
   0x7   : > { %p27_p0 = scmp.ge.s32.totalorder %s26_s25, 2  ;;  %p116_p1 = scmp.ne.s32.totalorder %s1405_s17, %s1401_s16 }
   0x8   : > { %p117_p2 = scmp.eq.s32.totalorder %s1099_s23, 3  ;;  %p122_p5 = scmp.ne.s32.totalorder %s1401_s16, %s1397_s15 }
   0x9   : > { %s1822_s25 = smov (%p27_p0, %s26_s25), 0  ;;  %s1824_s26 = smov (!%p27_p0, %s29_s26), %s1421_s21 }
   0xa   : > { %s102_s27 = ssub.s32 %s1417_s20, %s1822_s25  ;;  %p1515_p3 = por %p117_p2, %p116_p1 }
   0xb   : > { %p31_p4 = scmp.ge.s32.totalorder %s1824_s26, 2  ;;  %p123_p6 = scmp.eq.s32.totalorder %s1100_s24, 3 }
   0xc   : > { %p1103_p7 = scmp.ge.s32.totalorder %s1425_s22, 1  ;;  %p154_p9 = scmp.lt.s32.totalorder %s1425_s22, 5 }
   0xd   : > { %s1826_s26 = smov (%p31_p4, %s1824_s26), 0  ;;  %p1524_p8 = por %p123_p6, %p122_p5 }
   0xe   : > { %s101_s30 = ssub.s32 %s1421_s21, %s1826_s26  ;;  %s106_s5 = sadd.s32 1, %s1405_s17 }
   0xf   : > { %s103_s6 = sor.u32 %s102_s27, %s101_s30  ;;  %p155_p10 = pnand %p1103_p7, %p154_p9 }
  0x10   : > { %p104_p11 = scmp.eq.s32.totalorder %s103_s6, 0  ;;  %s1800_s8 = sand.u32 (!%p155_p10), 1, %s1401_s16  }
  0x11   : > { %158 = sbr.rel (%p155_p10) target bundleno = 561 (0x231), region = 32  ;;  %p177_p12 = scmp.lt.s32.totalorder (!%p155_p10), %s1409_s18, 1 }
  0x12   : > { %s1533_s7 = scalar_select %p104_p11, %s1405_s17, %s106_s5  }
  0x13   : > { %s1539_s9 = sshll.u32 (!%p155_p10), %s1800_s8, 2  ;;  %p1106_p13 = scmp.ne.s32.totalorder (!%p155_p10), %s1409_s18, 0 }
  0x14   : > { %s176_s23 = scalar_lea.vmem (!%p155_p10), [#allocation4], %s1539_s9 }
  0x18   : > { %s178_s10 = scalar_select %p177_p12, %s1409_s18, 1 }
  0x19   : > { %187 = sbr.rel (%p1106_p13) target bundleno = 39 (0x27), region = 36  ;;  %s1139_s24 = sshll.u32 (!%p1106_p13), %s1413_s19, 3 }
  0x1a   : > { %s1105_s11 = sshll.u32 %s178_s10, 1  ;;  %s190_s5 = scalar_lea.vmem (!%p1106_p13), %s1795_s0, %s1139_s24 }
  0x1b   : > { %s180_s14 = scalar_lea.vmem %s1796_s1, %s1105_s11  ;;  %v209_v0 = vld [vmem:[%s190_s5] sm:$0xf] (!%p1106_p13) }
  0x1c   : > { %210 = vst [vmem:[#allocation2 + $0x4] sm:$0xf] (!%p1106_p13), %v209_v0 }
  0x20   : > { %235 = vsyncadd [#allocation3], 64  ;;  %v1112_v1 = vld [vmem:[%s190_s5 + $0x4] sm:$0xf] }
  0x21   : > { %259 = vst [vmem:[#allocation2 + $0x8] sm:$0xf] %v1112_v1 }
  0x22   : > { %284 = vsyncadd [#allocation3 + $0x1], 64 }
  0x23   : > { %1387 = dma.done.wait [#allocation3], 64 }
  0x24   : > { %1388 = vsyncadd [#allocation3], 4294967232 }
  0x25   : > { %1389 = dma.done.wait [#allocation3 + $0x1], 64 }
  0x26   : > { %1390 = vsyncadd [#allocation3 + $0x1], 4294967232 }
  0x27 PF: > { %v304_v2 = vld [vmem:[%s180_s14] sm:$0x1]  ;;  %v305_v3 = vld [vmem:[%s180_s14 + $0x1] sm:$0x1]  ;;  %v318_v4 = vlaneseq  ;;  %v1427_v5 = vmov 0   ;;  %s1113_s6 = sshll.u32 %s1409_s18, 7 }
  0x28   : > { %vm306_vm0 = vcmp.ge.s32.totalorder %v304_v2, 1  ;;  %vm307_vm1 = vcmp.lt.s32.totalorder %v304_v2, 15  ;;  %vm308_vm2 = vcmp.ge.s32.totalorder %v305_v3, 1  ;;  %vm309_vm3 = vcmp.lt.s32.totalorder %v305_v3, 15  ;;  %1325 = vset.pattern.permute.xlu0 %v1427_v5  ;;  %s1428_s10 = smov 111   ;;  %s292_s11 = sshra.s32 %s1113_s6, 7 }
  0x29   : > { %vm316_vm4 = vmand %vm306_vm0, %vm308_vm2  ;;  %v319_v6 = vshrl.u32 %v318_v4, 7  ;;  %v664_v8 = vsel %vm309_vm3, 1, %v1427_v5  ;;  %v392_v9 = vsel %vm306_vm0, 1, %v1427_v5  ;;  %v813_v12 = vsel %vm307_vm1, 1, %v1427_v5  ;;  %s1429_s12 = smov 112   ;;  %s1114_s13 = sshll.u32 %s292_s11, 2 }
  0x2a   : > { %v317_v7 = vsel %vm316_vm4, 1, %v1427_v5  ;;  %vm738_vm5 = vmand %vm307_vm1, %vm308_vm2  ;;  %v541_v14 = vsel %vm308_vm2, 1, %v1427_v5  ;;  %s1430_s14 = smov 1   ;;  %s1431_s24 = smov 15   ;;  %v1436_v48 = vmov 0.0  }
  0x2b   : > { %v1557_v10 = vsub.s32 0, %v319_v6  ;;  %v739_v11 = vsel %vm738_vm5, 1, %v1427_v5  ;;  %vm466_vm6 = vmand %vm306_vm0, %vm309_vm3  ;;  %s1432_s27 = smov 113   ;;  %s295_s30 = scalar_lea.vmem [#allocation2], %s1114_s13  ;;  %1183 = vmatprep.subr.bf16.mxu0 %v1436_v48  ;;  %v1122_v50 = vld [vmem:[%s1797_s2 + $0x8] sm:$0x3]  ;;  %1159 = vmatprep.subr.bf16.mxu1 %v1436_v48 }
  0x2c   : > { %v467_v13 = vsel %vm466_vm6, 1, %v1427_v5  ;;  %vm887_vm7 = vmand %vm307_vm1, %vm309_vm3  ;;  %v1632_v44 = vld [vmem:[%s295_s30] sm:$0xff]  ;;  %s1433_s5 = smov 16   ;;  %s1434_s6 = smov 127   ;;  %v297_v52 = vld [vmem:[%s295_s30 + $0x8] sm:$0xf] }
  0x2d   : > { %v321_v15 = vrot.slane %v317_v7, %v1557_v10  ;;  %v668_v16 = vrot.slane %v664_v8, %v1557_v10  ;;  %v396_v17 = vrot.slane %v392_v9, %v1557_v10  ;;  %v743_v18 = vrot.slane %v739_v11, %v1557_v10  ;;  %s1435_s11 = smov 17   ;;  %s983_s13 = sshll.u32 %s176_s23, 4  ;;  %s1740_s13 = int_to_ptr.vmem [resolvable:$true] %s983_s13 }
  0x2e   : > { %v471_v19 = vrot.slane %v467_v13, %v1557_v10  ;;  %v817_v20 = vrot.slane %v813_v12, %v1557_v10  ;;  %v888_v21 = vsel %vm887_vm7, 1, %v1427_v5  ;;  %v545_v22 = vrot.slane %v541_v14, %v1557_v10  ;;  %v310_v14 = vld [vmem:[%s1798_s3] sm:$0xf] }
  0x2f   : > { %vm322_vm8 = vcmp.eq.s32.totalorder %v321_v15, 1  ;;  %vm669_vm9 = vcmp.eq.s32.totalorder %v668_v16, 1  ;;  %vm397_vm10 = vcmp.eq.s32.totalorder %v396_v17, 1  ;;  %vm1575_vm12 = vcmp.eq.s32.totalorder %v743_v18, 1 }
  0x30   : > { %vm323_vm11 = vmpackc.low %vm322_vm8, %vm322_vm8  ;;  %vm1580_vm14 = vcmp.eq.s32.totalorder %v471_v19, 1  ;;  %v892_v26 = vrot.slane %v888_v21, %v1557_v10  ;;  %vm1588_vm0 = vcmp.eq.s32.totalorder %v817_v20, 1  ;;  %vm1596_vm2 = vcmp.eq.s32.totalorder %v545_v22, 1  ;;  %v334_v19 = vld [vmem:[%s1797_s2] sm:$0x3] }
  0x31   : > { %v324_v24 = vsel %vm323_vm11, 65537, %v1427_v5  ;;  %vm670_vm13 = vmpackc.low %vm669_vm9, %vm669_vm9  ;;  %v299_v46 = vcombine.high %v1632_v44, %v1632_v44  ;;  %vm347_vm8 = vcmask 1041408   ;;  %vm1437_vm9 = vmmov 0  }
  0x32   : > { %v328_v27 = vrot.slane %v324_v24, %v1557_v10  ;;  %v671_v28 = vsel %vm670_vm13, 65537, %v1427_v5  ;;  %vm398_vm15 = vmpackc.low %vm397_vm10, %vm397_vm10  ;;  %vm1611_vm5 = vcmp.eq.s32.totalorder %v892_v26, 1  ;;  %1185 = vmatprep.mubr.msk.bf16.mxu0 %vm1437_vm9, %v1436_v48  ;;  %vm343_vm10 = vcmask 31744   ;;  %1161 = vmatprep.mubr.msk.bf16.mxu1 %vm1437_vm9, %v1436_v48  ;;  %v1124_v24 = vld [vmem:[%s1797_s2 + $0xa] sm:$0x3] }
  0x33   : > { %v399_v30 = vsel %vm398_vm15, 65537, %v1427_v5  ;;  %vm745_vm1 = vmpackc.low %vm1575_vm12, %vm1575_vm12  ;;  %v675_v32 = vrot.slane %v671_v28, %v1557_v10  ;;  %v302_v47 = vpack.c.bf16 %v299_v46, %v299_v46  ;;  %v301_v51 = vpack.c.bf16 %v1632_v44, %v1632_v44 }
  0x34   : > { %329 = vrot.lane.b32.xlu0 %v328_v27, %s1428_s10  ;;  %v403_v33 = vrot.slane %v399_v30, %v1557_v10  ;;  %v746_v34 = vsel %vm745_vm1, 65537, %v1427_v5  ;;  %vm473_vm3 = vmpackc.low %vm1580_vm14, %vm1580_vm14  ;;  %v303_v56 = vpack.c.bf16 %v297_v52, %v297_v52 }
  0x35   : > { %v474_v35 = vsel %vm473_vm3, 65537, %v1427_v5  ;;  %vm819_vm4 = vmpackc.low %vm1588_vm0, %vm1588_vm0  ;;  %v750_v37 = vrot.slane %v746_v34, %v1557_v10  ;;  %v621_v49 = vsel %vm347_vm8, %v302_v47, 0  ;;  %vm341_vm3 = vcmask 138240  }
  0x36   : > { %404 = vrot.lane.b32.xlu1 %v403_v33, %s1429_s12  ;;  %vm547_vm6 = vmpackc.low %vm1596_vm2, %vm1596_vm2  ;;  %v820_v38 = vsel %vm819_vm4, 65537, %v1427_v5  ;;  %v478_v39 = vrot.slane %v474_v35, %v1557_v10  ;;  %1184 = vmatpush3.bf16.msra.mxu0 %v621_v49  ;;  %vm689_vm4 = vcmask 1039360   ;;  %v1116_v33 = vld [vmem:[%s1797_s2 + $0x2] sm:$0x3] }
  0x37   : > { %vm894_vm7 = vmpackc.low %vm1611_vm5, %vm1611_vm5  ;;  %v548_v40 = vsel %vm547_vm6, 65537, %v1427_v5  ;;  %v824_v41 = vrot.slane %v820_v38, %v1557_v10  ;;  %1189 = vmatprep.subr.bf16.mxu0 %v1436_v48  ;;  %vm417_vm5 = vcmask 130048   ;;  %vm764_vm6 = vcmask 924672   ;;  %v1126_v38 = vld [vmem:[%s1797_s2 + $0xc] sm:$0x3] }
  0x38   : > { %676 = vrot.lane.b32.xlu0 %v675_v32, %s1430_s14  ;;  %v895_v42 = vsel %vm894_vm7, 65537, %v1427_v5  ;;  %v552_v43 = vrot.slane %v548_v40, %v1557_v10  ;;  %vm492_vm7 = vcmask 121856  }
  0x39   : > { %v899_v45 = vrot.slane %v895_v42, %v1557_v10  ;;  %1186 = vmatmul.mubr.msk.bf16.vlgmr.msra.gmra.mrb[0].mxu0 %vm343_vm10, %v1122_v50 }
  0x3a   : > { %751 = vrot.lane.b32.xlu1 %v750_v37, %s1431_s24  ;;  %1191 = vmatprep.mubr.msk.bf16.mxu0 %vm1437_vm9, %v1436_v48 }
  0x3c   : > { %479 = vrot.lane.b32.xlu0 %v478_v39, %s1432_s27 }
  0x3e   : > { %825 = vrot.lane.b32.xlu1 %v824_v41, %s1433_s5 }
  0x40   : > { %553 = vrot.lane.b32.xlu0 %v552_v43, %s1434_s6 }
  0x42   : > { %900 = vrot.lane.b32.xlu1 %v899_v45, %s1435_s11 }
  0xa6   : > { %v330_v53 = vpop.permute.xlu0 %329 }
  0xa7   : > { %vm331_vm11 = vcmp.ne.s16.totalorder %v330_v53, 0  ;;  %v1128_v53 = vld [vmem:[%s1797_s2 + $0xe] sm:$0x3] }
  0xa8   : > { %v332_v54 = vsel %vm331_vm11, %v301_v51, 0  ;;  %v333_v55 = vsel %vm331_vm11, %v302_v47, 0  ;;  %v405_v57 = vpop.permute.xlu1 %404  ;;  %vm838_vm11 = vcmask 916480  }
  0xa9   : > { %337 = vrot.lane.b32.xlu0 %v332_v54, %s1435_s11  ;;  %339 = vrot.lane.b32.xlu1 %v333_v55, %s1435_s11  ;;  %vm406_vm13 = vcmp.ne.s16.totalorder %v405_v57, 0  ;;  %v1120_v55 = vld [vmem:[%s1797_s2 + $0x6] sm:$0x3] }
  0xaa   : > { %v677_v58 = vpop.permute.xlu0 %676  ;;  %v407_v62 = vsel %vm406_vm13, %v301_v51, 0  ;;  %v408_v63 = vsel %vm406_vm13, %v302_v47, 0  ;;  %vm913_vm13 = vcmask 908288  }
  0xab   : > { %vm678_vm12 = vcmp.ne.s16.totalorder %v677_v58, 0 }
  0xac   : > { %v679_v59 = vsel %vm678_vm12, %v302_v47, 0  ;;  %v680_v60 = vsel %vm678_vm12, %v303_v56, 0  ;;  %v752_v61 = vpop.permute.xlu1 %751  ;;  %vm566_vm12 = vcmask 7168  }
  0xad   : > { %685 = vrot.lane.b32.xlu0 %v679_v59, %s1434_s6  ;;  %687 = vrot.lane.b32.xlu1 %v680_v60, %s1434_s6  ;;  %vm753_vm14 = vcmp.ne.s16.totalorder %v752_v61, 0 }
  0xae   : > { %v480_v0 = vpop.permute.xlu0 %479  ;;  %v754_v1 = vsel %vm753_vm14, %v302_v47, 0  ;;  %v755_v2 = vsel %vm753_vm14, %v303_v56, 0 }
  0xaf   : > { %vm481_vm15 = vcmp.ne.s16.totalorder %v480_v0, 0  ;;  %v963_v0 = vrot.slane %v1632_v44, 4 }
  0xb0   : > { %v826_v3 = vpop.permute.xlu1 %825  ;;  %v482_v4 = vsel %vm481_vm15, %v301_v51, 0  ;;  %v483_v5 = vsel %vm481_vm15, %v302_v47, 0 }
  0xb1   : > { %413 = vrot.lane.b32.xlu0 %v407_v62, %s1433_s5  ;;  %415 = vrot.lane.b32.xlu1 %v408_v63, %s1433_s5  ;;  %vm827_vm0 = vcmp.ne.s16.totalorder %v826_v3, 0  ;;  %s1133_s5 = sshll.u32 %s1413_s19, 1 }
  0xb2   : > { %v554_v6 = vpop.permute.xlu0 %553  ;;  %v828_v7 = vsel %vm827_vm0, %v302_v47, 0  ;;  %v829_v8 = vsel %vm827_vm0, %v303_v56, 0  ;;  %s979_s6 = sadd.s32 %s1409_s18, %s1133_s5  ;;  %s1813_s18 = sand.u32 1, %s1401_s16  }
  0xb3   : > { %vm555_vm1 = vcmp.ne.s16.totalorder %v554_v6, 0  ;;  %s1134_s11 = sshll.u32 %s979_s6, 6 }
  0xb4   : > { %v901_v9 = vpop.permute.xlu1 %900  ;;  %v556_v10 = vsel %vm555_vm1, %v301_v51, 0  ;;  %v557_v11 = vsel %vm555_vm1, %v302_v47, 0 }
  0xb5   : > { %760 = vrot.lane.b32.xlu0 %v754_v1, %s1432_s27  ;;  %762 = vrot.lane.b32.xlu1 %v755_v2, %s1432_s27  ;;  %vm902_vm2 = vcmp.ne.s16.totalorder %v901_v9, 0 }
  0xb6   : > { %v903_v12 = vsel %vm902_vm2, %v302_v47, 0  ;;  %v904_v13 = vsel %vm902_vm2, %v303_v56, 0  ;;  %v1118_v47 = vld [vmem:[%s1797_s2 + $0x4] sm:$0x3]  ;;  %v1130_v56 = vld [vmem:[%s1797_s2 + $0x10] sm:$0x3] }
  0xb9   : > { %488 = vrot.lane.b32.xlu0 %v482_v4, %s1431_s24  ;;  %490 = vrot.lane.b32.xlu1 %v483_v5, %s1431_s24  ;;  %s1738_s24 = scalar_lea.hbm %s1799_s4, %s1134_s11 }
  0xbd   : > { %834 = vrot.lane.b32.xlu0 %v828_v7, %s1429_s12  ;;  %836 = vrot.lane.b32.xlu1 %v829_v8, %s1429_s12  ;;  %s968_s12 = scalar_lea.sflag [#allocation5], %s1813_s18 }
  0xc1   : > { %562 = vrot.lane.b32.xlu0 %v556_v10, %s1430_s14  ;;  %564 = vrot.lane.b32.xlu1 %v557_v11, %s1430_s14  ;;  %s1327_s14 = scalar_lea.vmem %s1740_s13, 64 }
  0xc2   : > { %p1328_p0 = scmp.ne.s32.totalorder %s1740_s13, %s1327_s14 }
  0xc4   : > { %p1329_p1 = pnand %p1328_p0, %p1515_p3 }
  0xc5   : > { %909 = vrot.lane.b32.xlu0 %v903_v12, %s1428_s10  ;;  %911 = vrot.lane.b32.xlu1 %v904_v13, %s1428_s10  ;;  %s1438_s10 = smov [#allocation4]  }
  0xc6   : > { %p1330_p2 = pneg %p1329_p1  ;;  %s1331_s27 = sshll.u32 %s1438_s10, 4  ;;  %s1332_s27 = int_to_ptr.vmem [resolvable:$false] %s1331_s27 }
  0xc7   : > { %s1333_s30 = scalar_lea.vmem %s1332_s27, 128  ;;  %p1334_p4 = scmp.lt.s32.totalorder %s1740_s13, %s1332_s27 }
  0xc8   : > { %p1335_p5 = scmp.lt.s32.totalorder %s1333_s30, %s1327_s14 }
  0xc9   : > { %313 = vperm.xlu0 %1325, %v310_v14  }
  0xca   : > { %p1336_p6 = por %p1335_p5, %p1334_p4 }
  0xcc   : > { %p1337_p7 = pnand %p1336_p6, %p1330_p2 }
 0x11b   : > { %v338_v15 = vpop.permute.xlu0 %337  ;;  %v340_v16 = vpop.permute.xlu1 %339 }
 0x11c   : > { %v342_v17 = vsel %vm341_vm3, %v338_v15, %v340_v16 }
 0x11d   : > { %v349_v18 = vsel %vm347_vm8, %v342_v17, 0 }
 0x11e   : > { %1160 = vmatpush3.bf16.msra.mxu1 %v349_v18 }
 0x11f   : > { %v686_v20 = vpop.permute.xlu0 %685  ;;  %v688_v21 = vpop.permute.xlu1 %687  ;;  %1165 = vmatprep.subr.bf16.mxu1 %v1436_v48 }
 0x120   : > { %v690_v22 = vsel %vm689_vm4, %v686_v20, %v688_v21 }
 0x121   : > { %v695_v23 = vsel %vm347_vm8, %v690_v22, 0  ;;  %1162 = vmatmul.mubr.msk.bf16.vlgmr.msra.gmra.mrb[0].mxu1 %vm343_vm10, %v334_v19 }
 0x122   : > { %1190 = vmatpush3.bf16.msra.mxu0 %v695_v23  ;;  %1167 = vmatprep.mubr.msk.bf16.mxu1 %vm1437_vm9, %v1436_v48 }
 0x123   : > { %v414_v25 = vpop.permute.xlu0 %413  ;;  %v416_v26 = vpop.permute.xlu1 %415  ;;  %1195 = vmatprep.subr.bf16.mxu0 %v1436_v48 }
 0x124   : > { %v418_v27 = vsel %vm417_vm5, %v414_v25, %v416_v26 }
 0x125   : > { %1192 = vmatmul.mubr.msk.bf16.vlgmr.msra.gmra.mrb[0].mxu0 %vm343_vm10, %v1124_v24  ;;  %v423_v28 = vsel %vm347_vm8, %v418_v27, 0 }
 0x126   : > { %1166 = vmatpush3.bf16.msra.mxu1 %v423_v28  ;;  %1197 = vmatprep.mubr.msk.bf16.mxu0 %vm1437_vm9, %v1436_v48 }
 0x127   : > { %v761_v29 = vpop.permute.xlu0 %760  ;;  %v763_v30 = vpop.permute.xlu1 %762  ;;  %1171 = vmatprep.subr.bf16.mxu1 %v1436_v48 }
 0x128   : > { %v765_v31 = vsel %vm764_vm6, %v761_v29, %v763_v30 }
 0x129   : > { %v770_v32 = vsel %vm347_vm8, %v765_v31, 0 }
 0x12a   : > { %1196 = vmatpush3.bf16.msra.mxu0 %v770_v32 }
 0x12b   : > { %v489_v34 = vpop.permute.xlu0 %488  ;;  %v491_v35 = vpop.permute.xlu1 %490  ;;  %1201 = vmatprep.subr.bf16.mxu0 %v1436_v48 }
 0x12c   : > { %v493_v36 = vsel %vm492_vm7, %v489_v34, %v491_v35 }
 0x12d   : > { %1168 = vmatmul.mubr.msk.bf16.vlgmr.msra.gmra.mrb[0].mxu1 %vm343_vm10, %v1116_v33  ;;  %v498_v37 = vsel %vm347_vm8, %v493_v36, 0 }
 0x12e   : > { %1172 = vmatpush3.bf16.msra.mxu1 %v498_v37  ;;  %1173 = vmatprep.mubr.msk.bf16.mxu1 %vm1437_vm9, %v1436_v48 }
 0x12f   : > { %v835_v39 = vpop.permute.xlu0 %834  ;;  %v837_v40 = vpop.permute.xlu1 %836  ;;  %1177 = vmatprep.subr.bf16.mxu1 %v1436_v48 }
 0x130   : > { %v839_v41 = vsel %vm838_vm11, %v835_v39, %v837_v40 }
 0x131   : > { %1198 = vmatmul.mubr.msk.bf16.vlgmr.msra.gmra.mrb[0].mxu0 %vm343_vm10, %v1126_v38  ;;  %v844_v42 = vsel %vm347_vm8, %v839_v41, 0 }
 0x132   : > { %1202 = vmatpush3.bf16.msra.mxu0 %v844_v42  ;;  %1203 = vmatprep.mubr.msk.bf16.mxu0 %vm1437_vm9, %v1436_v48 }
 0x133   : > { %v563_v43 = vpop.permute.xlu0 %562  ;;  %v565_v45 = vpop.permute.xlu1 %564  ;;  %1207 = vmatprep.subr.bf16.mxu0 %v1436_v48 }
 0x134   : > { %v567_v46 = vsel %vm566_vm12, %v563_v43, %v565_v45 }
 0x135   : > { %v572_v49 = vsel %vm347_vm8, %v567_v46, 0 }
 0x137   : > { %v910_v50 = vpop.permute.xlu0 %909  ;;  %v912_v51 = vpop.permute.xlu1 %911 }
 0x138   : > { %v914_v52 = vsel %vm913_vm13, %v910_v50, %v912_v51 }
 0x139   : > { %1174 = vmatmul.mubr.msk.bf16.vlgmr.msra.gmra.mrb[0].mxu1 %vm343_vm10, %v1118_v47  ;;  %v919_v54 = vsel %vm347_vm8, %v914_v52, 0 }
 0x13a   : > { %1178 = vmatpush3.bf16.msra.mxu1 %v572_v49  ;;  %1179 = vmatprep.mubr.msk.bf16.mxu1 %vm1437_vm9, %v1436_v48 }
 0x13d   : > { %1204 = vmatmul.mubr.msk.bf16.vlgmr.msra.gmra.mrb[0].mxu0 %vm343_vm10, %v1128_v53 }
 0x13e   : > { %1208 = vmatpush3.bf16.msra.mxu0 %v919_v54  ;;  %1209 = vmatprep.mubr.msk.bf16.mxu0 %vm1437_vm9, %v1436_v48 }
 0x145   : > { %1180 = vmatmul.mubr.msk.bf16.vlgmr.msra.gmra.mrb[0].mxu1 %vm343_vm10, %v1120_v55 }
 0x148   : > { %v314_v57 = vpop.permute.xlu0 %313 }
 0x149   : > { %1210 = vmatmul.mubr.msk.bf16.vlgmr.msra.gmra.mrb[0].mxu0 %vm343_vm10, %v1130_v56 }
 0x218   : > { %v608_v58 = vpop.f32.mrb[0].mxu1 }
 0x219   : > { %v1181_v59 = vpop.f32.mrb[1].mxu1  ;;  %v1213_v48 = vadd.f32 %v608_v58, %v314_v57 }
 0x21a   : > { %v611_v60 = vpop.f32.mrb[2].mxu1 }
 0x21b   : > { %v1182_v61 = vpop.f32.mrb[3].mxu1 }
 0x21c   : > { %v955_v62 = vpop.f32.mrb[0].mxu0 }
 0x21d   : > { %v1214_v63 = vadd.f32 %v1213_v48, %v955_v62  ;;  %v1211_v1 = vpop.f32.mrb[1].mxu0 }
 0x21e   : > { %v958_v2 = vpop.f32.mrb[2].mxu0 }
 0x21f   : > { %v962_v3 = vmax.f32 %v1214_v63, 0.0  ;;  %v1212_v4 = vpop.f32.mrb[3].mxu0 }
 0x221   : > { %v965_v5 = vadd.f32 %v963_v0, %v962_v3 }
 0x223   : > { %966 = vst [vmem:[%s176_s23] sm:$0xf] %v965_v5 }
 0x224   : > { %1340 = shalt.err (!%p1337_p7)
}
 0x225   : > { %s1341_s9 = scalar_lea.hbm %s1738_s24, 64  ;;  %s1345_s6 = scalar_lea.hbm %s1799_s4, 256 }
 0x226   : > { %p1342_p9 = scmp.ne.s32.totalorder %s1738_s24, %s1341_s9  ;;  %p1346_p12 = scmp.lt.u32.totalorder %s1738_s24, %s1799_s4 }
 0x227   : > { %p1347_p13 = scmp.lt.u32.totalorder %s1345_s6, %s1341_s9  ;;  %p1349_p1 = scmp.lt.u32.totalorder %s1341_s9, %s1738_s24 }
 0x228   : > { %p1343_p10 = pnand %p1342_p9, %p1515_p3 }
 0x229   : > { %p1348_p0 = por %p1347_p13, %p1346_p12 }
 0x22a   : > { %p1344_p11 = pneg %p1343_p10 }
 0x22b   : > { %p1350_p2 = por %p1349_p1, %p1348_p0 }
 0x22d   : > { %p1351_p4 = pnand %p1350_p2, %p1344_p11 }
 0x22f   : > { %1354 = shalt.err (!%p1351_p4)
}
 0x230   : > { %1243 = dma.vmem_to_hbm [thread:$0]  (%p1515_p3), %s1740_s13, 64, %s1738_s24, %s968_s12  }
 0x231 PF: > { %p1249_p5 = scmp.ge.s32.totalorder %s1425_s22, 2  ;;  %s995_s8 = sand.u32 1, %s1397_s15  }
 0x232   : > { %s996_s18 = scalar_lea.sflag [#allocation5], %s995_s8 }
 0x233   : > { %p1246_p6 = pnand %p1249_p5, %p1524_p8 }
 0x235   : > { %1392 = dma.done.wait (!%p1246_p6), %s996_s18, 64  }
 0x236   : > { %1394 = vsyncadd (!%p1246_p6), %s996_s18, 4294967232  ;;  %s17_s22 = sadd.s32 1, %s1425_s22   ;;  %s1814_s15 = smov %s1401_s16 }
 0x237   : > { %p14_p7 = scmp.ge.s32.totalorder %s17_s22, 6   ;;  %s1815_s16 = smov %s1405_s17 }
 0x238   : > { %s1816_s17 = smov %s1533_s7  ;;  %s1817_s18 = smov %s1417_s20 }
 0x239   : > { %s1818_s19 = smov %s1421_s21  ;;  %s1819_s20 = smov %s1822_s25 }
 0x23a   : > { %s1820_s21 = smov %s1826_s26  ;;  %16 = sbr.rel (!%p14_p7) target bundleno = 5 (0x5), region = 166 }
 0x241   :  { %1001 = vsyncpa [#allocation5], 1 }
 0x242   :  { %1003 = vsyncpa [#allocation5 + $0x1], 1 }
 0x243   :  { %1004 = vsyncmov [#allocation3] }
 0x246   :  { %s1005_s28 = vpop.sfrf %1004 }
 0x247   :  { %p1137_p3 = scmp.ne.s32.totalorder %s1005_s28, 0 }
 0x249   :  { %1009 = shalt.err (%p1137_p3)  }
 0x24a   :  { %1011 = vsyncmov [#allocation3 + $0x1] }
 0x24d   :  { %s1012_s29 = vpop.sfrf %1011 }
 0x24e   :  { %p1138_p8 = scmp.ne.s32.totalorder %s1012_s29, 0 }
 0x250   :  { %1016 = shalt.err (%p1138_p8)  }

</bundles_post_ra>
